<compile_context>
chip_gen: v7x
topology: tpu7x:2x2x1
jax: 0.10.0
libtpu: 0.0.40
codegen_flags: <defaults>
</compile_context>

<pallas_src>
import functools
import math

import jax
import jax.numpy as jnp
from jax.experimental import pallas as pl
from jax.experimental.pallas import tpu as pltpu

_LANE = 128
_TARGET_TILE_BYTES = 4 << 20        # ~4 MiB tiles; 2x(in)+2x(out) buffers = 16 MiB
_VMEM_LIMIT_BYTES = 32 << 20        # explicit: safe on v5e/v6e (128 MiB) and v7x (64 MiB)
_SINGLE_BLOCK_BYTES = 512 << 10     # below this, a single block; launch cost dominates
# Below this element count, kernel launch + pipeline setup dominates; let XLA's
# fused elementwise op handle it (raised per review; demo overrides to 0).
_DEFAULT_MIN_ELEMENTS_FOR_PALLAS = 1 << 18


def _round_up(n, m):
    return ((n + m - 1) // m) * m


def _sublane_multiple(dtype):
    # Native sublane packing: 8 rows for 32-bit, 16 for 16-bit, 32 for 8-bit.
    return max(8, 32 // jnp.dtype(dtype).itemsize)


def _lambda_kernel(x_ref, o_ref, *, fn, compute_dtype):
    # Elementwise hot path: apply the lambda to the whole VMEM tile.
    x = x_ref[...]
    if compute_dtype is not None:
        # e.g. force f32 compute for bf16 inputs on v5e (no bf16 VPU/EUP path).
        # On v6e/v7x leave compute_dtype=None and stay in bf16 end-to-end.
        x = x.astype(compute_dtype)
    o_ref[...] = fn(x).astype(o_ref.dtype)


def _pick_block_rows(rows, lane_padded, itemsize, sub):
    """Row block: ~4 MiB VMEM tiles, sublane-aligned, grid >= 2 when it pays."""
    total_bytes = rows * lane_padded * itemsize
    if rows < 2 * sub or total_bytes <= _SINGLE_BLOCK_BYTES:
        return rows                      # single full-extent block (always legal)
    max_rows = max(sub, (_TARGET_TILE_BYTES // (lane_padded * itemsize)) // sub * sub)
    # Split at least in two so both TensorCores get work under "parallel"
    # dimension semantics (v7x megacore), but never exceed the ~4 MiB target.
    return min(max_rows, _round_up(pl.cdiv(rows, 2), sub))


def _run_pallas_2d(fn, x2d, *, compute_dtype, donate_input,
                   elementwise_flops, elementwise_transcendentals):
    rows, lane_w = x2d.shape
    itemsize = jnp.dtype(x2d.dtype).itemsize
    sub = _sublane_multiple(x2d.dtype)
    lane_padded = _round_up(lane_w, _LANE)

    block_rows = _pick_block_rows(rows, lane_padded, itemsize, sub)
    # Rows are never rounded up to a block multiple: the boundary block (if
    # any) is masked by Pallas (OOB reads are garbage, OOB writes dropped).
    grid_rows = pl.cdiv(rows, block_rows)

    probe_dtype = compute_dtype if compute_dtype is not None else x2d.dtype
    out_dtype = jax.eval_shape(
        fn, jax.ShapeDtypeStruct(x2d.shape, probe_dtype)).dtype

    total = rows * lane_w
    cost = pl.CostEstimate(
        flops=int(elementwise_flops * total),
        transcendentals=int(elementwise_transcendentals * total),
        bytes_accessed=int(total * (itemsize + jnp.dtype(out_dtype).itemsize)),
    )

    extra = {}
    if donate_input and out_dtype == x2d.dtype:
        # Reuse the input HBM buffer for the output (opt-in: the caller must
        # not need x afterwards, or XLA will insert a copy anyway).
        extra["input_output_aliases"] = {0: 0}

    return pl.pallas_call(
        functools.partial(_lambda_kernel, fn=fn, compute_dtype=compute_dtype),
        out_shape=jax.ShapeDtypeStruct((rows, lane_w), out_dtype),
        grid_spec=pltpu.PrefetchScalarGridSpec(
            num_scalar_prefetch=0,
            grid=(grid_rows,),
            in_specs=[pl.BlockSpec((block_rows, lane_w), lambda i: (i, 0))],
            out_specs=pl.BlockSpec((block_rows, lane_w), lambda i: (i, 0)),
        ),
        compiler_params=pltpu.CompilerParams(
            dimension_semantics=("parallel",),     # shards grid across v7x's 2 TCs
            vmem_limit_bytes=_VMEM_LIMIT_BYTES,
        ),
        cost_estimate=cost,
        **extra,
    )(x2d)


def make_lambda_module(fn, *, compute_dtype=None, donate_input=False,
                       min_elements_for_pallas=_DEFAULT_MIN_ELEMENTS_FOR_PALLAS,
                       elementwise_flops=2, elementwise_transcendentals=1):
    """Returns a callable equivalent to LambdaModule(fn).forward for
    elementwise jnp-traceable `fn`.

    TODO(synk): fn is assumed elementwise / shape- and position-independent;
    shape- or axis-dependent lambdas must use the plain-JAX path (set
    min_elements_for_pallas very large) since the 2-D view would change their
    semantics.
    """

    def forward(x):
        orig_shape = x.shape
        total = x.size

        # Tiny-input fast path: plain JAX is strictly faster here.
        if total == 0 or x.ndim == 0 or total < min_elements_for_pallas:
            return fn(x if compute_dtype is None else x.astype(compute_dtype))

        itemsize = jnp.dtype(x.dtype).itemsize
        sub = _sublane_multiple(x.dtype)
        lane_w = orig_shape[-1]
        lane_padded = _round_up(lane_w, _LANE)

        # --- Path A: layout-preserving 2-D view, zero wrapper-side copies.
        # Collapsing all leading dims while keeping the minor (lane) dim is a
        # bitcast of the existing (sublane, lane)-tiled HBM layout whenever the
        # second-minor dim is sublane-aligned (or there is nothing to collapse),
        # so no relayout/pad/slice HBM round trips happen outside the kernel.
        collapse_ok = (
            x.ndim >= 2
            and (x.ndim == 2
                 or orig_shape[-2] % sub == 0
                 or math.prod(orig_shape[:-2]) == 1)
            and sub * lane_padded * itemsize <= _TARGET_TILE_BYTES
        )
        if collapse_ok:
            rows = total // lane_w
            x2d = x if x.ndim == 2 else x.reshape(rows, lane_w)
            out2d = _run_pallas_2d(
                fn, x2d, compute_dtype=compute_dtype, donate_input=donate_input,
                elementwise_flops=elementwise_flops,
                elementwise_transcendentals=elementwise_transcendentals)
            return out2d.reshape(orig_shape)

        # --- Path B: fallback for awkward shapes (1-D, unaligned second-minor
        # dim, or a huge minor dim).  Pad the flat array only to the next
        # lane-width multiple (never to a block multiple) and slice it back.
        # TODO(synk): padded lanes see fn(0); harmless (sliced off) unless
        # fn(0) is NaN/Inf and a NaN-checking debug mode is active.
        lane_w = 512 if total >= 512 * 8 else _LANE
        padded_total = _round_up(total, lane_w)
        flat = x.reshape(-1)
        if padded_total != total:
            flat = jnp.pad(flat, (0, padded_total - total))
        rows = padded_total // lane_w
        x2d = flat.reshape(rows, lane_w)
        out2d = _run_pallas_2d(
            fn, x2d, compute_dtype=compute_dtype, donate_input=donate_input,
            elementwise_flops=elementwise_flops,
            elementwise_transcendentals=elementwise_transcendentals)
        out_flat = out2d.reshape(-1)
        if padded_total != total:
            out_flat = out_flat[:total]
        return out_flat.reshape(orig_shape)

    return forward


if __name__ == "__main__":
    # Representative deterministic lambda (elementwise, jnp-traceable).
    lambda_fn = lambda x: jnp.tanh(x) + 0.5 * x

    key = jax.random.PRNGKey(0)
    k1, k2, k3, k4 = jax.random.split(key, 4)

    # Force the Pallas path even for small inputs so the kernel actually runs.
    module = make_lambda_module(lambda_fn, min_elements_for_pallas=0)

    # 1) Module-sized NCHW input: layout-preserving collapse to (128, 16),
    #    single full-extent block, no pad, no relayout.
    x = jax.random.normal(k1, (2, 4, 16, 16), dtype=jnp.float32)
    y = jax.block_until_ready(module(x))
    y_ref = lambda_fn(x)
    assert y.shape == x.shape and y.dtype == y_ref.dtype
    assert jnp.allclose(y, y_ref, atol=1e-5, rtol=1e-5)

    # 2) Larger input exercising the multi-block pipelined path:
    #    collapse to (32768, 64), ~4 MiB VMEM tiles, grid of 4, no copies.
    x2 = jax.random.normal(k2, (8, 64, 64, 64), dtype=jnp.float32)
    y2 = jax.block_until_ready(module(x2))
    assert jnp.allclose(y2, lambda_fn(x2), atol=1e-5, rtol=1e-5)

    # 3) Odd size exercising Path B (flat pad of 23 elements, then slice back).
    x3 = jax.random.normal(k3, (3, 5, 7), dtype=jnp.float32)
    y3 = jax.block_until_ready(module(x3))
    assert jnp.allclose(y3, lambda_fn(x3), atol=1e-5, rtol=1e-5)

    # 4) Row count not divisible by the block: Pallas-masked boundary block
    #    (grid of 2, block 504 rows), no wrapper pad/slice at all.
    x4 = jax.random.normal(k4, (1000, 256), dtype=jnp.float32)
    y4 = jax.block_until_ready(module(x4))
    assert jnp.allclose(y4, lambda_fn(x4), atol=1e-5, rtol=1e-5)

    print("KERNEL_OK")
</pallas_src>

<mosaic_0001>
module attributes {stable_mosaic.version = 11 : i64} {
  func.func @_lambda_kernel(%arg0: i32, %arg1: memref<128x16xf32, #tpu.memory_space<vmem>>, %arg2: memref<128x16xf32, #tpu.memory_space<vmem>>) attributes {dimension_semantics = [#tpu.dimension_semantics<parallel>], iteration_bounds = array<i64: 1>, scalar_prefetch = 0 : i64, scratch_operands = 0 : i64, tpu.core_type = #tpu.core_type<tc>, window_params = [{transform_indices = @transform_0, window_bounds = array<i64: 128, 16>}, {transform_indices = @transform_1, window_bounds = array<i64: 128, 16>}]} {
    %c0 = arith.constant 0 : index
    %c0_0 = arith.constant 0 : index
    %0 = vector.load %arg1[%c0, %c0_0] : memref<128x16xf32, #tpu.memory_space<vmem>>, vector<128x16xf32>
    %1 = math.tanh %0 : vector<128x16xf32>
    %cst = arith.constant 5.000000e-01 : f32
    %2 = vector.broadcast %cst : f32 to vector<128x16xf32>
    %3 = arith.mulf %2, %0 : vector<128x16xf32>
    %4 = arith.addf %1, %3 : vector<128x16xf32>
    %c0_1 = arith.constant 0 : index
    %c0_2 = arith.constant 0 : index
    %5 = vector.load %arg2[%c0_1, %c0_2] : memref<128x16xf32, #tpu.memory_space<vmem>>, vector<128x16xf32>
    tpu.vector_store %arg2[%c0_1, %c0_2], %4 {strides = array<i32>} : memref<128x16xf32, #tpu.memory_space<vmem>>, vector<128x16xf32>,
    return
  }
  func.func @transform_0(%arg0: i32) -> (i32, i32) {
    %c0_i32 = arith.constant 0 : i32
    %c0_i32_0 = arith.constant 0 : i32
    return %arg0, %c0_i32 : i32, i32
  }
  func.func @transform_1(%arg0: i32) -> (i32, i32) {
    %c0_i32 = arith.constant 0 : i32
    %c0_i32_0 = arith.constant 0 : i32
    return %arg0, %c0_i32 : i32, i32
  }
}

</mosaic_0001>

<bundles_post_ra>
// kernel: tpu_custom_call.1
= control target key start
LH: loop header
LB: loop body
LE: loop exit
PB: predicated region body
PF: predicated region fallthrough
CT: control target
= control target key end

     0   :  { %vm72_vm0 = vcmask 130048   ;;  %s247_s0 = inlined_call_operand.vmem [shape: f32[128,16], index: 0, kind: input, shape index: {}]   ;;  %s248_s1 = inlined_call_operand.vmem [shape: f32[128,16], index: 1, kind: output, shape index: {}]  }
   0x1   :  { %v8_v0 = vld [vmem:[%s247_s0] sm:$0xff]  ;;  %v9_v1 = vld [vmem:[%s247_s0 + $0x8] sm:$0xff]  ;;  %v10_v2 = vld [vmem:[%s247_s0 + $0x10] sm:$0xff] }
   0x2   :  { %93 = vtanh.f32 %v8_v0  ;;  %v11_v3 = vld [vmem:[%s247_s0 + $0x18] sm:$0xff]  ;;  %v12_v4 = vld [vmem:[%s247_s0 + $0x20] sm:$0xff]  ;;  %v13_v5 = vld [vmem:[%s247_s0 + $0x28] sm:$0xff]  ;;  %v40_v10 = vmul.f32 0.5, %v8_v0  ;;  %v41_v12 = vmul.f32 0.5, %v9_v1  ;;  %v42_v14 = vmul.f32 0.5, %v10_v2 }
   0x3   :  { %95 = vtanh.f32 %v9_v1  ;;  %v14_v6 = vld [vmem:[%s247_s0 + $0x30] sm:$0xff]  ;;  %v15_v7 = vld [vmem:[%s247_s0 + $0x38] sm:$0xff]  ;;  %v16_v8 = vld [vmem:[%s247_s0 + $0x40] sm:$0xff]  ;;  %v43_v17 = vmul.f32 0.5, %v11_v3  ;;  %v44_v21 = vmul.f32 0.5, %v12_v4  ;;  %v45_v25 = vmul.f32 0.5, %v13_v5 }
   0x4   :  { %97 = vtanh.f32 %v10_v2  ;;  %v17_v9 = vld [vmem:[%s247_s0 + $0x48] sm:$0xff]  ;;  %v18_v11 = vld [vmem:[%s247_s0 + $0x50] sm:$0xff]  ;;  %v19_v13 = vld [vmem:[%s247_s0 + $0x58] sm:$0xff]  ;;  %v46_v29 = vmul.f32 0.5, %v14_v6  ;;  %v47_v32 = vmul.f32 0.5, %v15_v7  ;;  %v48_v35 = vmul.f32 0.5, %v16_v8 }
   0x5   :  { %99 = vtanh.f32 %v11_v3  ;;  %v20_v15 = vld [vmem:[%s247_s0 + $0x60] sm:$0xff]  ;;  %v21_v18 = vld [vmem:[%s247_s0 + $0x68] sm:$0xff]  ;;  %v22_v22 = vld [vmem:[%s247_s0 + $0x70] sm:$0xff]  ;;  %v49_v38 = vmul.f32 0.5, %v17_v9  ;;  %v50_v41 = vmul.f32 0.5, %v18_v11  ;;  %v51_v44 = vmul.f32 0.5, %v19_v13 }
   0x6   :  { %101 = vtanh.f32 %v12_v4  ;;  %v23_v26 = vld [vmem:[%s247_s0 + $0x78] sm:$0xff]  ;;  %v52_v47 = vmul.f32 0.5, %v20_v15  ;;  %v53_v50 = vmul.f32 0.5, %v21_v18  ;;  %v54_v53 = vmul.f32 0.5, %v22_v22 }
   0x7   :  { %103 = vtanh.f32 %v13_v5  ;;  %v55_v56 = vmul.f32 0.5, %v23_v26 }
   0x8   :  { %105 = vtanh.f32 %v14_v6 }
   0x9   :  { %107 = vtanh.f32 %v15_v7 }
   0xa   :  { %109 = vtanh.f32 %v16_v8 }
   0xb   :  { %111 = vtanh.f32 %v17_v9 }
   0xc   :  { %v94_v16 = vpop.eup %93  ;;  %113 = vtanh.f32 %v18_v11 }
   0xd   :  { %v96_v19 = vpop.eup %95  ;;  %v56_v20 = vadd.f32 %v94_v16, %v40_v10  ;;  %115 = vtanh.f32 %v19_v13 }
   0xe   :  { %v98_v23 = vpop.eup %97  ;;  %v57_v24 = vadd.f32 %v96_v19, %v41_v12  ;;  %117 = vtanh.f32 %v20_v15 }
   0xf   :  { %v100_v27 = vpop.eup %99  ;;  %73 = vst.msk [vmem:[%s248_s1] sm:$0xff] %vm72_vm0, %v56_v20  ;;  %v58_v28 = vadd.f32 %v98_v23, %v42_v14  ;;  %119 = vtanh.f32 %v21_v18 }
  0x10   :  { %v102_v30 = vpop.eup %101  ;;  %74 = vst.msk [vmem:[%s248_s1 + $0x8] sm:$0xff] %vm72_vm0, %v57_v24  ;;  %v59_v31 = vadd.f32 %v100_v27, %v43_v17  ;;  %121 = vtanh.f32 %v22_v22 }
  0x11   :  { %v104_v33 = vpop.eup %103  ;;  %75 = vst.msk [vmem:[%s248_s1 + $0x10] sm:$0xff] %vm72_vm0, %v58_v28  ;;  %v60_v34 = vadd.f32 %v102_v30, %v44_v21  ;;  %123 = vtanh.f32 %v23_v26 }
  0x12   :  { %v106_v36 = vpop.eup %105  ;;  %76 = vst.msk [vmem:[%s248_s1 + $0x18] sm:$0xff] %vm72_vm0, %v59_v31  ;;  %v61_v37 = vadd.f32 %v104_v33, %v45_v25 }
  0x13   :  { %v108_v39 = vpop.eup %107  ;;  %77 = vst.msk [vmem:[%s248_s1 + $0x20] sm:$0xff] %vm72_vm0, %v60_v34  ;;  %v62_v40 = vadd.f32 %v106_v36, %v46_v29 }
  0x14   :  { %v110_v42 = vpop.eup %109  ;;  %78 = vst.msk [vmem:[%s248_s1 + $0x28] sm:$0xff] %vm72_vm0, %v61_v37  ;;  %v63_v43 = vadd.f32 %v108_v39, %v47_v32 }
  0x15   :  { %v112_v45 = vpop.eup %111  ;;  %79 = vst.msk [vmem:[%s248_s1 + $0x30] sm:$0xff] %vm72_vm0, %v62_v40  ;;  %v64_v46 = vadd.f32 %v110_v42, %v48_v35 }
  0x16   :  { %v114_v48 = vpop.eup %113  ;;  %80 = vst.msk [vmem:[%s248_s1 + $0x38] sm:$0xff] %vm72_vm0, %v63_v43  ;;  %v65_v49 = vadd.f32 %v112_v45, %v49_v38 }
  0x17   :  { %v116_v51 = vpop.eup %115  ;;  %81 = vst.msk [vmem:[%s248_s1 + $0x40] sm:$0xff] %vm72_vm0, %v64_v46  ;;  %v66_v52 = vadd.f32 %v114_v48, %v50_v41 }
  0x18   :  { %v118_v54 = vpop.eup %117  ;;  %82 = vst.msk [vmem:[%s248_s1 + $0x48] sm:$0xff] %vm72_vm0, %v65_v49  ;;  %v67_v55 = vadd.f32 %v116_v51, %v51_v44 }
  0x19   :  { %v120_v57 = vpop.eup %119  ;;  %83 = vst.msk [vmem:[%s248_s1 + $0x50] sm:$0xff] %vm72_vm0, %v66_v52  ;;  %v68_v58 = vadd.f32 %v118_v54, %v52_v47 }
  0x1a   :  { %v122_v59 = vpop.eup %121  ;;  %84 = vst.msk [vmem:[%s248_s1 + $0x58] sm:$0xff] %vm72_vm0, %v67_v55  ;;  %v69_v60 = vadd.f32 %v120_v57, %v53_v50 }
  0x1b   :  { %v124_v61 = vpop.eup %123  ;;  %85 = vst.msk [vmem:[%s248_s1 + $0x60] sm:$0xff] %vm72_vm0, %v68_v58  ;;  %v70_v62 = vadd.f32 %v122_v59, %v54_v53 }
  0x1c   :  { %86 = vst.msk [vmem:[%s248_s1 + $0x68] sm:$0xff] %vm72_vm0, %v69_v60  ;;  %v71_v63 = vadd.f32 %v124_v61, %v55_v56 }
  0x1d   :  { %87 = vst.msk [vmem:[%s248_s1 + $0x70] sm:$0xff] %vm72_vm0, %v70_v62 }
  0x1e   :  { %88 = vst.msk [vmem:[%s248_s1 + $0x78] sm:$0xff] %vm72_vm0, %v71_v63 }

</bundles_post_ra>
